<compile_context>
chip_gen: v5e
topology: v5e:2x2
jax: 0.10.0
libtpu: 0.0.40
codegen_flags: <defaults>
</compile_context>

<pallas_src>
import jax
import jax.numpy as jnp
from jax.experimental import pallas as pl
from jax.experimental.pallas import tpu as pltpu


def _round_up(x, m):
    return ((x + m - 1) // m) * m


def downstream_task_kernel(idx_ref, x_ref, w1_ref, b1_ref, w2_ref, b2_ref,
                           out_ref, acc_ref):
    # Grid: (g, k) with g over graph tiles ("parallel") and k over node tiles ("arbitrary").
    # idx_ref: [1, tile_n] int32    global graph id per node (-1 = padding node)
    # x_ref:   [tile_n, D]          node embeddings, streamed in pool dtype (bf16 or f32)
    # w1_ref:  [D, D], b1_ref: [1, D], w2_ref: [D, C], b2_ref: [1, C]   (f32, resident)
    # out_ref: [tile_g, C] f32      log-softmax logits for this graph tile
    # acc_ref: [tile_g, D] f32      VMEM accumulator for the sum-pool
    g = pl.program_id(0)
    k = pl.program_id(1)

    @pl.when(k == 0)
    def _init():
        acc_ref[...] = jnp.zeros_like(acc_ref)

    x = x_ref[...]                                   # [tile_n, D] pool dtype
    tg = acc_ref.shape[0]
    tn = x.shape[0]

    # one_hot_t[r, n] == 1 iff node n belongs to graph (g*tg + r).
    # Subtract the tile offset on the cheap [1, tile_n] row, compare against the row iota,
    # and cast the bool directly to the matmul dtype (one-hot values are exact in bf16).
    idx_local = idx_ref[...] - g * tg                            # [1, tile_n] int32
    row_ids = jax.lax.broadcasted_iota(jnp.int32, (tg, tn), 0)   # [tg, tile_n]
    one_hot_t = (row_ids == idx_local).astype(x.dtype)           # [tg, tile_n]

    # Sum-pool as a one-hot @ x matmul on the MXU; accumulation stays f32.
    acc_ref[...] += jnp.dot(one_hot_t, x, preferred_element_type=jnp.float32)

    @pl.when(k == pl.num_programs(1) - 1)
    def _finalize():
        graph_emb = acc_ref[...]                                              # [tg, D] f32
        h = jnp.dot(graph_emb, w1_ref[...],
                    preferred_element_type=jnp.float32) + b1_ref[...]
        h = jnp.maximum(h, 0.0)
        logits = jnp.dot(h, w2_ref[...],
                         preferred_element_type=jnp.float32) + b2_ref[...]    # [tg, C]
        m = jnp.max(logits, axis=-1, keepdims=True)
        shifted = logits - m
        lse = jnp.log(jnp.sum(jnp.exp(shifted), axis=-1, keepdims=True))
        out_ref[...] = (shifted - lse).astype(out_ref.dtype)


def downstream_task_forward(node_embedding_matrix, batch_x_index, params,
                            num_graphs, *, tile_n=None, tile_g=None,
                            pool_dtype=jnp.bfloat16):
    """node_embedding_matrix: [N, D]; batch_x_index: [N] int; returns [num_graphs, C] log-probs.

    Nodes with graph id outside [0, num_graphs) are silently dropped (same as jax segment_sum).
    With pool_dtype=bf16 the node embeddings are rounded to bf16 before the f32-accumulated
    pooling matmul (small per-graph rounding error; use pool_dtype=f32 for exact pooling).
    """
    w1, b1, w2, b2 = params
    N, D = node_embedding_matrix.shape
    C = w2.shape[1]
    x_bytes = jnp.dtype(pool_dtype).itemsize

    # ---- graph tile: pool as many graphs per x pass as reasonable. With num_graphs <= 256
    # the whole batch is one tile and x is streamed from HBM exactly once. ----
    g_ceil = _round_up(max(num_graphs, 1), 8)
    if tile_g is None:
        tile_g = min(g_ceil, 256)
    tile_g = min(_round_up(max(tile_g, 1), 8), g_ceil)
    g_pad = _round_up(num_graphs, tile_g)

    # ---- node tile: ~8 MiB of streamed x per tile (16 MiB double-buffered), 512-aligned
    # when N is large enough so the bf16 MXU contraction cadence stays full. ----
    n_ceil = _round_up(N, 128)
    if tile_n is None:
        max_tile_n = max(512, ((8 * 1024 * 1024) // (D * x_bytes)) // 512 * 512)
        tile_n = n_ceil if n_ceil <= max_tile_n else max_tile_n
    tile_n = _round_up(tile_n, 128)
    n_pad = _round_up(N, tile_n)

    # Cast x to the streamed dtype in the wrapper (halves HBM bytes for bf16).
    x = node_embedding_matrix.astype(pool_dtype)
    if n_pad != N:
        x = jnp.pad(x, ((0, n_pad - N), (0, 0)))
    idx = batch_x_index.astype(jnp.int32)
    idx = jnp.pad(idx, (0, n_pad - N), constant_values=-1).reshape(1, n_pad)

    w1 = w1.astype(jnp.float32)
    w2 = w2.astype(jnp.float32)
    b1_2d = b1.reshape(1, D).astype(jnp.float32)
    b2_2d = b2.reshape(1, C).astype(jnp.float32)

    grid = (g_pad // tile_g, n_pad // tile_n)
    g_tiles = grid[0]

    # ---- explicit VMEM budget (hint), derived from the actual tile footprint.
    # All BlockSpec inputs are double-buffered by the pipeliner; count them as such. ----
    c_lanes = _round_up(C, 128)
    est_bytes = (
        2 * tile_n * D * x_bytes                       # x stream (double-buffered)
        + 2 * 8 * tile_n * 4                           # idx stream (sublane-padded)
        + 2 * (D * D + 8 * D) * 4                      # w1 + b1 (double-buffered)
        + 2 * (D * c_lanes + 8 * c_lanes) * 4          # w2 + b2 (double-buffered, lane-padded)
        + tile_g * D * 4                               # accumulator scratch
        + 2 * _round_up(tile_g, 8) * c_lanes * 4       # output block
        + tile_g * _round_up(tile_n, 128) * x_bytes    # one-hot intermediate
    )
    # <= 48 MiB keeps headroom on v7x (64 MiB VMEM); v5e/v6e (128 MiB) fit trivially.
    vmem_limit = int(min(max(2 * est_bytes, 16 * 1024 * 1024), 48 * 1024 * 1024))

    cost = pl.CostEstimate(
        flops=(2 * g_tiles * tile_g * n_pad * D        # one-hot pooling matmuls
               + 2 * g_pad * D * D + 2 * g_pad * D * C),
        transcendentals=g_pad * C,
        bytes_accessed=(g_tiles * (n_pad * D * x_bytes + n_pad * 4)
                        + (D * D + D + D * C + C) * 4
                        + g_pad * C * 4),
    )

    out = pl.pallas_call(
        downstream_task_kernel,
        out_shape=jax.ShapeDtypeStruct((g_pad, C), jnp.float32),
        grid_spec=pltpu.PrefetchScalarGridSpec(
            num_scalar_prefetch=0,
            grid=grid,
            in_specs=[
                pl.BlockSpec((1, tile_n), lambda g, k: (0, k)),   # graph id per node (streamed)
                pl.BlockSpec((tile_n, D), lambda g, k: (k, 0)),   # node embeddings (streamed)
                pl.BlockSpec((D, D), lambda g, k: (0, 0)),        # w1 (resident)
                pl.BlockSpec((1, D), lambda g, k: (0, 0)),        # b1 (resident)
                pl.BlockSpec((D, C), lambda g, k: (0, 0)),        # w2 (resident)
                pl.BlockSpec((1, C), lambda g, k: (0, 0)),        # b2 (resident)
            ],
            out_specs=pl.BlockSpec((tile_g, C), lambda g, k: (g, 0)),
            scratch_shapes=[pltpu.VMEM((tile_g, D), jnp.float32)],
        ),
        compiler_params=pltpu.CompilerParams(
            dimension_semantics=("parallel", "arbitrary"),
            vmem_limit_bytes=vmem_limit,
        ),
        cost_estimate=cost,
    )(idx, x, w1, b1_2d, w2, b2_2d)

    return out[:num_graphs]


def init_params(key, gnn_embedding_dim, num_classes):
    k1, k2 = jax.random.split(key)
    w1 = jax.random.normal(k1, (gnn_embedding_dim, gnn_embedding_dim), jnp.float32) * 0.1
    b1 = jnp.zeros((gnn_embedding_dim,), jnp.float32)
    w2 = jax.random.normal(k2, (gnn_embedding_dim, num_classes), jnp.float32) * 0.1
    b2 = jnp.zeros((num_classes,), jnp.float32)
    return w1, b1, w2, b2


def reference_forward(node_embedding_matrix, batch_x_index, params, num_graphs):
    w1, b1, w2, b2 = params
    graph_emb = jax.ops.segment_sum(node_embedding_matrix, batch_x_index,
                                    num_segments=num_graphs)
    h = jnp.maximum(graph_emb @ w1 + b1, 0.0)
    logits = h @ w2 + b2
    return jax.nn.log_softmax(logits, axis=1)


if __name__ == "__main__":
    # Small synthetic shapes: 256 nodes, embedding dim 64, 16 graphs, 8 classes.
    N_NODES, EMB_DIM, N_GRAPHS, N_CLASSES = 256, 64, 16, 8

    key = jax.random.PRNGKey(0)
    k_emb, k_par = jax.random.split(key, 2)

    node_embedding_matrix = jax.random.normal(k_emb, (N_NODES, EMB_DIM), jnp.float32)
    # each graph owns a contiguous block of nodes (sorted index, like PyG batching)
    batch_x_index = jnp.repeat(jnp.arange(N_GRAPHS, dtype=jnp.int32),
                               N_NODES // N_GRAPHS)
    params = init_params(k_par, EMB_DIM, N_CLASSES)

    ref = reference_forward(node_embedding_matrix, batch_x_index, params, N_GRAPHS)

    # f32 pooling path, forced small tiles (exercises the multi-step reduction on the node
    # axis AND multiple graph tiles): matches the f32 reference tightly.
    out_f32 = downstream_task_forward(node_embedding_matrix, batch_x_index, params,
                                      N_GRAPHS, tile_n=128, tile_g=8,
                                      pool_dtype=jnp.float32)
    out_f32 = jax.block_until_ready(out_f32)
    assert out_f32.shape == (N_GRAPHS, N_CLASSES)
    assert jnp.allclose(out_f32, ref, atol=1e-4, rtol=1e-4), "f32 path mismatch vs reference"

    # Default performance config: bf16 stream, all graphs pooled in a single x pass
    # (single graph tile, x read from HBM exactly once). bf16 input rounding -> loose tol.
    out_bf16 = downstream_task_forward(node_embedding_matrix, batch_x_index, params,
                                       N_GRAPHS)
    out_bf16 = jax.block_until_ready(out_bf16)
    assert out_bf16.shape == (N_GRAPHS, N_CLASSES)
    assert jnp.allclose(out_bf16, ref, atol=5e-2, rtol=5e-2), "bf16 path mismatch vs reference"

    print("KERNEL_OK")
</pallas_src>

<mosaic_0001>
module attributes {stable_mosaic.version = 11 : i64} {
  func.func @downstream_task_kernel(%arg0: i32, %arg1: i32, %arg2: memref<1x128xi32, #tpu.memory_space<vmem>>, %arg3: memref<128x64xf32, #tpu.memory_space<vmem>>, %arg4: memref<64x64xf32, #tpu.memory_space<vmem>>, %arg5: memref<1x64xf32, #tpu.memory_space<vmem>>, %arg6: memref<64x8xf32, #tpu.memory_space<vmem>>, %arg7: memref<1x8xf32, #tpu.memory_space<vmem>>, %arg8: memref<8x8xf32, #tpu.memory_space<vmem>>, %arg9: memref<8x64xf32, #tpu.memory_space<vmem>>) attributes {dimension_semantics = [#tpu.dimension_semantics<parallel>, #tpu.dimension_semantics<arbitrary>], iteration_bounds = array<i64: 2, 2>, scalar_prefetch = 0 : i64, scratch_operands = 1 : i64, tpu.core_type = #tpu.core_type<tc>, window_params = [{transform_indices = @transform_0, window_bounds = array<i64: 1, 128>}, {transform_indices = @transform_1, window_bounds = array<i64: 128, 64>}, {pipeline_mode = #tpu.pipeline_mode<synchronous>, transform_indices = @transform_2, window_bounds = array<i64: 64, 64>}, {pipeline_mode = #tpu.pipeline_mode<synchronous>, transform_indices = @transform_3, window_bounds = array<i64: 1, 64>}, {pipeline_mode = #tpu.pipeline_mode<synchronous>, transform_indices = @transform_4, window_bounds = array<i64: 64, 8>}, {pipeline_mode = #tpu.pipeline_mode<synchronous>, transform_indices = @transform_5, window_bounds = array<i64: 1, 8>}, {transform_indices = @transform_6, window_bounds = array<i64: 8, 8>}]} {
    %c0_i32 = arith.constant 0 : i32
    %0 = arith.cmpi eq, %arg1, %c0_i32 : i32
    %1 = arith.extui %0 : i1 to i32
    %c0_i32_0 = arith.constant 0 : i32
    %2 = arith.cmpi ne, %1, %c0_i32_0 : i32
    scf.if %2 {
      %cst_9 = arith.constant 0.000000e+00 : f32
      %20 = vector.broadcast %cst_9 : f32 to vector<8x64xf32>
      %c0_10 = arith.constant 0 : index
      %c0_11 = arith.constant 0 : index
      %21 = vector.load %arg9[%c0_10, %c0_11] : memref<8x64xf32, #tpu.memory_space<vmem>>, vector<8x64xf32>
      tpu.vector_store %arg9[%c0_10, %c0_11], %20 {strides = array<i32>} : memref<8x64xf32, #tpu.memory_space<vmem>>, vector<8x64xf32>,
    } else {
    }
    %c0 = arith.constant 0 : index
    %c0_1 = arith.constant 0 : index
    %3 = vector.load %arg3[%c0, %c0_1] : memref<128x64xf32, #tpu.memory_space<vmem>>, vector<128x64xf32>
    %c0_2 = arith.constant 0 : index
    %c0_3 = arith.constant 0 : index
    %4 = vector.load %arg2[%c0_2, %c0_3] : memref<1x128xi32, #tpu.memory_space<vmem>>, vector<1x128xi32>
    %c8_i32 = arith.constant 8 : i32
    %5 = arith.muli %arg0, %c8_i32 : i32
    %6 = vector.broadcast %5 : i32 to vector<1x128xi32>
    %7 = arith.subi %4, %6 : vector<1x128xi32>
    %8 = tpu.iota {dimensions = array<i32: 0>} : vector<8x128xi32>
    %9 = vector.broadcast %7 : vector<1x128xi32> to vector<8x128xi32>
    %10 = arith.cmpi eq, %8, %9 : vector<8x128xi32>
    %11 = arith.extui %10 : vector<8x128xi1> to vector<8x128xi32>
    %12 = arith.sitofp %11 : vector<8x128xi32> to vector<8x128xf32>
    %c0_4 = arith.constant 0 : index
    %c0_5 = arith.constant 0 : index
    %13 = vector.load %arg9[%c0_4, %c0_5] : memref<8x64xf32, #tpu.memory_space<vmem>>, vector<8x64xf32>
    %cst = arith.constant dense<0.000000e+00> : vector<8x64xf32>
    %14 = tpu.matmul %12, %3, %cst {dimension_numbers = #tpu.dot_dimension_numbers<[1], [0], [0], [1], [0, 0, 1, 1], [], []>} : vector<8x128xf32>, vector<128x64xf32>, vector<8x64xf32> -> vector<8x64xf32>
    %15 = arith.addf %13, %14 : vector<8x64xf32>
    %c0_6 = arith.constant 0 : index
    %c0_7 = arith.constant 0 : index
    %16 = vector.load %arg9[%c0_6, %c0_7] : memref<8x64xf32, #tpu.memory_space<vmem>>, vector<8x64xf32>
    tpu.vector_store %arg9[%c0_6, %c0_7], %15 {strides = array<i32>} : memref<8x64xf32, #tpu.memory_space<vmem>>, vector<8x64xf32>,
    %c1_i32 = arith.constant 1 : i32
    %17 = arith.cmpi eq, %arg1, %c1_i32 : i32
    %18 = arith.extui %17 : i1 to i32
    %c0_i32_8 = arith.constant 0 : i32
    %19 = arith.cmpi ne, %18, %c0_i32_8 : i32
    scf.if %19 {
      %c0_9 = arith.constant 0 : index
      %c0_10 = arith.constant 0 : index
      %20 = vector.load %arg9[%c0_9, %c0_10] : memref<8x64xf32, #tpu.memory_space<vmem>>, vector<8x64xf32>
      %c0_11 = arith.constant 0 : index
      %c0_12 = arith.constant 0 : index
      %21 = vector.load %arg4[%c0_11, %c0_12] : memref<64x64xf32, #tpu.memory_space<vmem>>, vector<64x64xf32>
      %cst_13 = arith.constant dense<0.000000e+00> : vector<8x64xf32>
      %22 = tpu.matmul %20, %21, %cst_13 {dimension_numbers = #tpu.dot_dimension_numbers<[1], [0], [0], [1], [0, 0, 1, 1], [], []>} : vector<8x64xf32>, vector<64x64xf32>, vector<8x64xf32> -> vector<8x64xf32>
      %c0_14 = arith.constant 0 : index
      %c0_15 = arith.constant 0 : index
      %23 = vector.load %arg5[%c0_14, %c0_15] : memref<1x64xf32, #tpu.memory_space<vmem>>, vector<1x64xf32>
      %24 = vector.broadcast %23 : vector<1x64xf32> to vector<8x64xf32>
      %25 = arith.addf %22, %24 : vector<8x64xf32>
      %cst_16 = arith.constant 0.000000e+00 : f32
      %26 = vector.broadcast %cst_16 : f32 to vector<8x64xf32>
      %27 = arith.maximumf %25, %26 : vector<8x64xf32>
      %c0_17 = arith.constant 0 : index
      %c0_18 = arith.constant 0 : index
      %28 = vector.load %arg6[%c0_17, %c0_18] : memref<64x8xf32, #tpu.memory_space<vmem>>, vector<64x8xf32>
      %cst_19 = arith.constant dense<0.000000e+00> : vector<8x8xf32>
      %29 = tpu.matmul %27, %28, %cst_19 {dimension_numbers = #tpu.dot_dimension_numbers<[1], [0], [0], [1], [0, 0, 1, 1], [], []>} : vector<8x64xf32>, vector<64x8xf32>, vector<8x8xf32> -> vector<8x8xf32>
      %c0_20 = arith.constant 0 : index
      %c0_21 = arith.constant 0 : index
      %30 = vector.load %arg7[%c0_20, %c0_21] : memref<1x8xf32, #tpu.memory_space<vmem>>, vector<1x8xf32>
      %31 = vector.broadcast %30 : vector<1x8xf32> to vector<8x8xf32>
      %32 = arith.addf %29, %31 : vector<8x8xf32>
      %cst_22 = arith.constant dense<0xFF800000> : vector<8xf32>
      %33 = vector.multi_reduction <maximumf>, %32, %cst_22 [1] : vector<8x8xf32> to vector<8xf32>
      %34 = vector.shape_cast %33 : vector<8xf32> to vector<8x1xf32>
      %35 = vector.broadcast %34 : vector<8x1xf32> to vector<8x8xf32>
      %36 = arith.subf %32, %35 : vector<8x8xf32>
      %37 = math.exp %36 : vector<8x8xf32>
      %cst_23 = arith.constant dense<0.000000e+00> : vector<8xf32>
      %38 = vector.multi_reduction <add>, %37, %cst_23 [1] : vector<8x8xf32> to vector<8xf32>
      %39 = vector.shape_cast %38 : vector<8xf32> to vector<8x1xf32>
      %40 = math.log %39 : vector<8x1xf32>
      %41 = vector.broadcast %40 : vector<8x1xf32> to vector<8x8xf32>
      %42 = arith.subf %36, %41 : vector<8x8xf32>
      %c0_24 = arith.constant 0 : index
      %c0_25 = arith.constant 0 : index
      %43 = vector.load %arg8[%c0_24, %c0_25] : memref<8x8xf32, #tpu.memory_space<vmem>>, vector<8x8xf32>
      tpu.vector_store %arg8[%c0_24, %c0_25], %42 {strides = array<i32>} : memref<8x8xf32, #tpu.memory_space<vmem>>, vector<8x8xf32>,
    } else {
    }
    return
  }
  func.func @transform_0(%arg0: i32, %arg1: i32) -> (i32, i32) {
    %c0_i32 = arith.constant 0 : i32
    %c0_i32_0 = arith.constant 0 : i32
    return %c0_i32, %arg1 : i32, i32
  }
  func.func @transform_1(%arg0: i32, %arg1: i32) -> (i32, i32) {
    %c0_i32 = arith.constant 0 : i32
    %c0_i32_0 = arith.constant 0 : i32
    return %arg1, %c0_i32 : i32, i32
  }
  func.func @transform_2(%arg0: i32, %arg1: i32) -> (i32, i32) {
    %c0_i32 = arith.constant 0 : i32
    %c0_i32_0 = arith.constant 0 : i32
    %c0_i32_1 = arith.constant 0 : i32
    return %c0_i32, %c0_i32_0 : i32, i32
  }
  func.func @transform_3(%arg0: i32, %arg1: i32) -> (i32, i32) {
    %c0_i32 = arith.constant 0 : i32
    %c0_i32_0 = arith.constant 0 : i32
    %c0_i32_1 = arith.constant 0 : i32
    return %c0_i32, %c0_i32_0 : i32, i32
  }
  func.func @transform_4(%arg0: i32, %arg1: i32) -> (i32, i32) {
    %c0_i32 = arith.constant 0 : i32
    %c0_i32_0 = arith.constant 0 : i32
    %c0_i32_1 = arith.constant 0 : i32
    return %c0_i32, %c0_i32_0 : i32, i32
  }
  func.func @transform_5(%arg0: i32, %arg1: i32) -> (i32, i32) {
    %c0_i32 = arith.constant 0 : i32
    %c0_i32_0 = arith.constant 0 : i32
    %c0_i32_1 = arith.constant 0 : i32
    return %c0_i32, %c0_i32_0 : i32, i32
  }
  func.func @transform_6(%arg0: i32, %arg1: i32) -> (i32, i32) {
    %c0_i32 = arith.constant 0 : i32
    %c0_i32_0 = arith.constant 0 : i32
    return %arg0, %c0_i32 : i32, i32
  }
}

</mosaic_0001>

<bundles_post_ra>
// kernel: tpu_custom_call.1
= control target key start
LH: loop header
LB: loop body
LE: loop exit
PB: predicated region body
PF: predicated region fallthrough
CT: control target
= control target key end

     0   :  { %s639_s21 = smov 0   ;;  %s641_s22 = smov 0   ;;  %s794_s0 = inlined_call_operand.vmem [shape: s32[1,256], index: 0, kind: input, shape index: {}]   ;;  %s795_s1 = inlined_call_operand.vmem [shape: f32[256,64], index: 1, kind: input, shape index: {}]   ;;  %s796_s2 = inlined_call_operand.vmem [shape: f32[64,64], index: 2, kind: input, shape index: {}]   ;;  %s797_s3 = inlined_call_operand.vmem [shape: f32[1,64], index: 3, kind: input, shape index: {}]   ;;  %s798_s4 = inlined_call_operand.vmem [shape: f32[64,8], index: 4, kind: input, shape index: {}]   ;;  %s799_s5 = inlined_call_operand.vmem [shape: f32[1,8], index: 5, kind: input, shape index: {}]   ;;  %s800_s6 = inlined_call_operand.vmem [shape: f32[16,8], index: 6, kind: output, shape index: {}]  }
   0x1   :  { %s643_s23 = smov 0   ;;  %s645_s24 = smov 0  }
   0x2   :  { %s647_s25 = smov 0  }
   0x3 LB: > { %s25_s26 = sadd.s32 1, %s592_s23  ;;  %s28_s27 = sadd.s32 1, %s596_s24  ;;  %s600_s25 = sphi %s647_s25, %s16_s25   ;;  %s596_s24 = sphi %s645_s24, %s804_s24   ;;  %s592_s23 = sphi %s643_s23, %s803_s23   ;;  %s588_s22 = sphi %s641_s22, %s802_s22   ;;  %s584_s21 = sphi %s639_s21, %s801_s21  }
   0x4   : > { %p26_p0 = scmp.ge.s32.totalorder %s25_s26, 2  ;;  %p501_p1 = scmp.ge.s32.totalorder %s600_s25, 1 }
   0x5   : > { %p233_p2 = scmp.lt.s32.totalorder %s600_s25, 5 }
   0x6   : > { %s806_s26 = smov (%p26_p0, %s25_s26), 0  ;;  %s808_s27 = smov (!%p26_p0, %s28_s27), %s596_s24 }
   0x7   : > { %p234_p3 = pnand %p501_p1, %p233_p2  ;;  %p30_p4 = scmp.ge.s32.totalorder %s808_s27, 2 }
   0x8   : > { %p265_p5 = scmp.lt.s32.totalorder (!%p234_p3), %s584_s21, 1  ;;  %s502_s28 = sshll.u32 (!%p234_p3), %s584_s21, 4 }
   0x9   : > { %s810_s27 = smov (%p30_p4, %s808_s27), 0  ;;  %237 = sbr.rel (%p234_p3) target bundleno = 716 (0x2cc), region = 44 }
   0xa   : > { %p269_p6 = scmp.lt.s32.totalorder (!%p234_p3), %s502_s28, 31  ;;  %p274_p7 = scmp.lt.s32.totalorder (!%p234_p3), %s588_s22, 1 }
   0xb   : > { %p505_p8 = scmp.ne.s32.totalorder (!%p234_p3), %s584_s21, 0 }
   0xe   : > { %s677_s29 = scalar_select %p265_p5, %s584_s21, 1 }
   0xf   : > { %s812_s28 = smov (!%p269_p6, %s502_s28), 31 }
  0x10   : > { %s267_s8 = scalar_lea.vmem %s794_s0, %s677_s29  ;;  %s503_s9 = sshll.u32 %s812_s28, 3 }
  0x11   : > { %s686_s12 = scalar_lea.vmem %s795_s1, %s503_s9  ;;  %281 = sbr.rel (%p505_p8) target bundleno = 24 (0x18), region = 48 }
  0x12   : > { %s275_s13 = scalar_select %p274_p7, %s588_s22, 1 }
  0x14   : > { %s504_s14 = sshll.u32 %s275_s13, 3 }
  0x15   : > { %s692_s17 = scalar_lea.vmem %s800_s6, %s504_s14 }
  0x16   : > { %vm282_vm0 = vcmask 523264   ;;  %v602_v0 = vmov 0.0  }
  0x17   : > { %283 = vst.msk [vmem:[#allocation2] sm:$0xff] %vm282_vm0, %v602_v0 }
  0x18 PF: > { %v299_v1 = vld [vmem:[%s686_s12 + $0x78] sm:$0xff]  ;;  %v298_v2 = vld [vmem:[%s686_s12 + $0x70] sm:$0xff]  ;;  %v297_v3 = vld [vmem:[%s686_s12 + $0x68] sm:$0xff]  ;;  %s506_s18 = sshll.u32 %s588_s22, 3  ;;  %v304_v16 = vlaneseq  ;;  %v603_v23 = vmov 1.0   ;;  %vm332_vm2 = vcmask 523264  }
  0x19   : > { %311 = vmatpush.msra.mxu0 %v299_v1  ;;  %v296_v4 = vld [vmem:[%s686_s12 + $0x60] sm:$0xff]  ;;  %v295_v5 = vld [vmem:[%s686_s12 + $0x58] sm:$0xff]  ;;  %v294_v6 = vld [vmem:[%s686_s12 + $0x50] sm:$0xff]  ;;  %v302_v13 = vstv %s506_s18  ;;  %p509_p9 = scmp.ne.s32.totalorder %s584_s21, 1 }
  0x1a   : > { %v293_v7 = vld [vmem:[%s686_s12 + $0x48] sm:$0xff]  ;;  %v292_v8 = vld [vmem:[%s686_s12 + $0x40] sm:$0xff]  ;;  %v291_v9 = vld [vmem:[%s686_s12 + $0x38] sm:$0xff]  ;;  %v305_v19 = vshrl.u32 %v304_v16, 7 }
  0x1b   : > { %312 = vmatpush.msra.mxu0 %v298_v2  ;;  %v290_v10 = vld [vmem:[%s686_s12 + $0x30] sm:$0xff]  ;;  %v289_v11 = vld [vmem:[%s686_s12 + $0x28] sm:$0xff]  ;;  %v300_v12 = vld [vmem:[%s267_s8] sm:$0x1] }
  0x1c   : > { %v288_v14 = vld [vmem:[%s686_s12 + $0x20] sm:$0xff]  ;;  %v303_v15 = vsub.s32 %v300_v12, %v302_v13  ;;  %v287_v17 = vld [vmem:[%s686_s12 + $0x18] sm:$0xff]  ;;  %v286_v18 = vld [vmem:[%s686_s12 + $0x10] sm:$0xff] }
  0x1d   : > { %313 = vmatpush.msra.mxu0 %v297_v3  ;;  %v285_v21 = vld [vmem:[%s686_s12 + $0x8] sm:$0xff]  ;;  %v284_v22 = vld [vmem:[%s686_s12] sm:$0xff] }
  0x1e   : > { %v306_v20 = vperm.slane %v303_v15, 0  ;;  %v310_v24 = vld [vmem:[#allocation2] sm:$0xff] }
  0x1f   : > { %314 = vmatpush.msra.mxu0 %v296_v4 }
  0x20   : > { %vm307_vm1 = vcmp.eq.s32.totalorder %v305_v19, %v306_v20 }
  0x21   : > { %315 = vmatpush.msra.mxu0 %v295_v5 }
  0x23   : > { %316 = vmatpush.msra.mxu0 %v294_v6 }
  0x25   : > { %317 = vmatpush.msra.mxu0 %v293_v7 }
  0x27   : > { %318 = vmatpush.msra.mxu0 %v292_v8 }
  0x29   : > { %319 = vmatpush.msra.mxu0 %v291_v9 }
  0x2b   : > { %320 = vmatpush.msra.mxu0 %v290_v10 }
  0x2d   : > { %321 = vmatpush.msra.mxu0 %v289_v11 }
  0x2f   : > { %322 = vmatpush.msra.mxu0 %v288_v14 }
  0x31   : > { %323 = vmatpush.msra.mxu0 %v287_v17 }
  0x33   : > { %324 = vmatpush.msra.mxu0 %v286_v18 }
  0x35   : > { %325 = vmatpush.msra.mxu0 %v285_v21 }
  0x37   : > { %326 = vmatpush.msra.mxu0 %v284_v22 }
  0x38   : > { %508 = vmatmul.msk.f32.vlgmr.msra.gmra.mxu0 %vm307_vm1, %v603_v23 }
  0xb4   : > { %337 = sbr.rel (%p509_p9) target bundleno = 716 (0x2cc), region = 52 }
  0xb5   : > { %v328_v25 = vpop.f32.mrf.mxu0 }
  0xb6   : > { %v331_v26 = vadd.f32 %v328_v25, %v310_v24 }
  0xb8   : > { %333 = vst.msk [vmem:[#allocation2] sm:$0xff] %vm332_vm2, %v331_v26 }
  0xb9   : > { %v346_v27 = vld [vmem:[%s796_s2 + $0x38] sm:$0xff]  ;;  %v345_v28 = vld [vmem:[%s796_s2 + $0x30] sm:$0xff]  ;;  %v344_v29 = vld [vmem:[%s796_s2 + $0x28] sm:$0xff]  ;;  %vm410_vm3 = vcmask 64512  }
  0xba   : > { %362 = vmatpush.msra.mxu0 %v346_v27  ;;  %v382_v30 = vld [vmem:[%s798_s4 + $0x38] sm:$0xff]  ;;  %v381_v31 = vld [vmem:[%s798_s4 + $0x30] sm:$0xff]  ;;  %v343_v32 = vld [vmem:[%s796_s2 + $0x20] sm:$0xff] }
  0xbb   : > { %398 = vmatpush.msra.mxu1 %v382_v30  ;;  %v380_v33 = vld [vmem:[%s798_s4 + $0x28] sm:$0xff]  ;;  %v342_v34 = vld [vmem:[%s796_s2 + $0x18] sm:$0xff]  ;;  %v379_v35 = vld [vmem:[%s798_s4 + $0x20] sm:$0xff] }
  0xbc   : > { %363 = vmatpush.msra.mxu0 %v345_v28  ;;  %v341_v36 = vld [vmem:[%s796_s2 + $0x10] sm:$0xff]  ;;  %v378_v37 = vld [vmem:[%s798_s4 + $0x18] sm:$0xff]  ;;  %v340_v38 = vld [vmem:[%s796_s2 + $0x8] sm:$0xff] }
  0xbd   : > { %399 = vmatpush.msra.mxu1 %v381_v31  ;;  %v339_v39 = vld [vmem:[%s796_s2] sm:$0xff]  ;;  %v377_v41 = vld [vmem:[%s798_s4 + $0x10] sm:$0xff]  ;;  %v376_v42 = vld [vmem:[%s798_s4 + $0x8] sm:$0xff] }
  0xbe   : > { %364 = vmatpush.msra.mxu0 %v344_v29  ;;  %v375_v43 = vld [vmem:[%s798_s4] sm:$0xff] }
  0xbf   : > { %400 = vmatpush.msra.mxu1 %v380_v33  ;;  %v338_v40 = vld [vmem:[#allocation2] sm:$0xff] }
  0xc0   : > { %365 = vmatpush.msra.mxu0 %v343_v32  ;;  %v556_v44 = vld [vmem:[%s797_s3] ss:$0 sm:$0xff] }
  0xc1   : > { %401 = vmatpush.msra.mxu1 %v379_v35  ;;  %v557_v48 = vld [vmem:[%s799_s5] ss:$0 sm:$0xff] }
  0xc2   : > { %366 = vmatpush.msra.mxu0 %v342_v34 }
  0xc3   : > { %402 = vmatpush.msra.mxu1 %v378_v37 }
  0xc4   : > { %367 = vmatpush.msra.mxu0 %v341_v36 }
  0xc5   : > { %403 = vmatpush.msra.mxu1 %v377_v41 }
  0xc6   : > { %368 = vmatpush.msra.mxu0 %v340_v38 }
  0xc7   : > { %404 = vmatpush.msra.mxu1 %v376_v42 }
  0xc8   : > { %369 = vmatpush.msra.mxu0 %v339_v39 }
  0xc9   : > { %510 = vmatmul.msk.f32.vlgmr.msra.gmra.mxu0 %vm332_vm2, %v338_v40  ;;  %405 = vmatpush.msra.mxu1 %v375_v43 }
 0x146   : > { %v371_v45 = vpop.f32.mrf.mxu0 }
 0x147   : > { %v372_v46 = vadd.f32 %v556_v44, %v371_v45 }
 0x149   : > { %v374_v47 = vmax.f32 %v372_v46, 0.0 }
 0x14b   : > { %511 = vmatmul.msk.f32.vlgmr.msra.gmra.mxu1 %vm332_vm2, %v374_v47 }
 0x1c8   : > { %v407_v49 = vpop.f32.mrf.mxu1 }
 0x1c9   : > { %v408_v50 = vadd.f32 %v557_v48, %v407_v49 }
 0x1cb   : > { %v411_v51 = vsel %vm410_vm3, %v408_v50, -inf }
 0x1cc   : > { %412 = vmax.xlane.f32.xlu0 %v411_v51 }
 0x23f   : > { %v413_v52 = vpop.xlane.xlu0 %412 }
 0x240   : > { %v414_v53 = vsub.f32 %v408_v50, %v413_v52 }
 0x242   : > { %v415_v54 = vmul.f32 1.442695, %v414_v53 }
 0x244   : > { %558 = vpow2.f32 %v415_v54 }
 0x24a   : > { %v559_v55 = vpop.eup %558 }
 0x24b   : > { %v417_v56 = vsel %vm410_vm3, %v559_v55, 0.0 }
 0x24c   : > { %418 = vadd.xlane.f32.xlu0 %v417_v56 }
 0x2bf   : > { %v419_v57 = vpop.xlane.xlu0 %418 }
 0x2c0   : > { %560 = vlog2.f32 %v419_v57 }
 0x2c6   : > { %v561_v58 = vpop.eup %560 }
 0x2c7   : > { %v421_v59 = vmul.f32 0.6931472, %v561_v58 }
 0x2c9   : > { %v422_v60 = vsub.f32 %v414_v53, %v421_v59 }
 0x2cb   : > { %423 = vst.msk [vmem:[%s692_s17] sm:$0xff] %vm410_vm3, %v422_v60 }
 0x2cc PF: > { %s16_s25 = sadd.s32 1, %s600_s25   ;;  %s801_s21 = smov %s592_s23 }
 0x2cd   : > { %p13_p10 = scmp.ge.s32.totalorder %s16_s25, 6   ;;  %s802_s22 = smov %s596_s24 }
 0x2ce   : > { %s803_s23 = smov %s806_s26  ;;  %s804_s24 = smov %s810_s27 }
 0x2cf   :  { %15 = sbr.rel (!%p13_p10) target bundleno = 3 (0x3), region = 85 }

</bundles_post_ra>
